<compile_context>
chip_gen: v7x
topology: tpu7x:2x2x1
jax: 0.10.0
libtpu: 0.0.40
codegen_flags: <defaults>
</compile_context>

<pallas_src>
import functools
import math

import jax
import jax.numpy as jnp
from jax import lax
from jax.experimental import pallas as pl
from jax.experimental.pallas import tpu as pltpu


# ----------------------------------------------------------------------------
# Generation-aware VMEM budgeting & tile helpers
# ----------------------------------------------------------------------------
@functools.lru_cache(maxsize=None)
def _vmem_limit_bytes():
    """Scoped-VMEM limit derived from the local TPU generation.

    v5e/v6e: 128 MiB physical -> 96 MiB scoped limit (headroom for 512+-row
    tiles on the bandwidth-bound projections).  v7x / unknown: 64 MiB physical
    -> 48 MiB scoped limit; the tile pickers below shrink accordingly.
    """
    phys = 64 << 20
    try:
        info = pltpu.get_tpu_info()
        phys = int(getattr(info, "vmem_capacity_bytes", phys))
    except Exception:
        pass  # no TPU info available -> assume the smallest generation
    return (96 << 20) if phys >= (128 << 20) else (48 << 20)


def _itemsize(dtype):
    return jnp.dtype(dtype).itemsize


def _divisor_tile(n, cap, quantum):
    """Largest t <= cap dividing n with t % quantum == 0, else the full dim n."""
    cap = min(n, cap)
    for t in range(cap, 0, -1):
        if n % t == 0 and (t % quantum == 0 or t == n):
            return t
    return n


_ROW_TILE_CAPS = (1024, 512, 256, 128, 64, 32, 16, 8)


def _pick_row_tile(m, per_row_bytes, fixed_bytes, budget):
    for cap in _ROW_TILE_CAPS:
        tm = _divisor_tile(m, cap, 8)
        if fixed_bytes + tm * per_row_bytes <= budget:
            return tm
    return _divisor_tile(m, 8, 8)


# ----------------------------------------------------------------------------
# Projection kernels (tiled / fused linears)
# ----------------------------------------------------------------------------
def _linear_kernel(x_ref, w_ref, b_ref, o_ref):
    y = jnp.dot(x_ref[...], w_ref[...], preferred_element_type=jnp.float32)
    o_ref[...] = (y + b_ref[...].astype(jnp.float32)).astype(o_ref.dtype)


def pallas_linear(x, w, b):
    """x: (B, L, Din) @ w: (Din, Dout) + b -> (B, L, Dout). Row+column tiled."""
    B, L, Din = x.shape
    Dout = w.shape[1]
    M = B * L
    x2 = x.reshape(M, Din)
    limit = _vmem_limit_bytes()
    budget = int(limit * 0.9)
    xi, wi = _itemsize(x.dtype), _itemsize(w.dtype)

    # Prefer the full output width (weight DMA'd once, resident) when it fits,
    # but insist on >=512-row tiles when M is large (mem-bound roofline).
    best = None
    for tn_cap in (Dout, 1024, 512, 256, 128):
        tn = _divisor_tile(Dout, tn_cap, 128)
        fixed = 2 * Din * tn * wi + 2 * tn * 4
        per_row = 2 * Din * xi + 2 * tn * xi
        tm = _pick_row_tile(M, per_row, fixed, budget)
        if fixed + tm * per_row <= budget:
            if best is None:
                best = (tm, tn)
            if tm >= min(M, 512):
                best = (tm, tn)
                break
    if best is None:
        best = (_divisor_tile(M, 8, 8), _divisor_tile(Dout, 128, 128))
    tm, tn = best

    out = pl.pallas_call(
        _linear_kernel,
        out_shape=jax.ShapeDtypeStruct((M, Dout), x.dtype),
        grid=(pl.cdiv(M, tm), pl.cdiv(Dout, tn)),
        in_specs=[
            pl.BlockSpec((tm, Din), lambda i, j: (i, 0)),
            pl.BlockSpec((Din, tn), lambda i, j: (0, j)),
            pl.BlockSpec((1, tn), lambda i, j: (0, j)),
        ],
        out_specs=pl.BlockSpec((tm, tn), lambda i, j: (i, j)),
        compiler_params=pltpu.CompilerParams(
            dimension_semantics=("parallel", "parallel"),
            vmem_limit_bytes=limit),
    )(x2, w, b.reshape(1, Dout))
    return out.reshape(B, L, Dout)


def _make_proj_kernel(n_out):
    """Kernel projecting one row tile of x through n_out (W, b) pairs."""
    def kernel(*refs):
        x_ref = refs[0]
        w_refs = refs[1:1 + n_out]
        b_refs = refs[1 + n_out:1 + 2 * n_out]
        o_refs = refs[1 + 2 * n_out:]
        x = x_ref[...]                                   # (tm, Din)
        for w_ref, b_ref, o_ref in zip(w_refs, b_refs, o_refs):
            y = jnp.dot(x, w_ref[...], preferred_element_type=jnp.float32)
            o_ref[...] = (y + b_ref[...].astype(jnp.float32)).astype(o_ref.dtype)
    return kernel


def fused_projection(x, weights, biases):
    """One pass over x through several (W, b) pairs; list of (B, L, Dout_i).

    Falls back to column-tiled pallas_linear when keeping all weights resident
    (double-buffered) would not leave room for at least a 256-row tile.
    """
    B, L, Din = x.shape
    M = B * L
    limit = _vmem_limit_bytes()
    budget = int(limit * 0.9)
    xi = _itemsize(x.dtype)

    fixed = sum(2 * Din * w.shape[1] * _itemsize(w.dtype) for w in weights)
    fixed += sum(2 * w.shape[1] * 4 for w in weights)            # biases
    per_row = 2 * Din * xi + sum(2 * w.shape[1] * xi for w in weights)

    # TODO(synk): single-buffer the constant-index weight blocks via
    # pipeline_mode=pl.Buffered(1) to halve `fixed` once that path is verified.
    if fixed + min(M, 256) * per_row > budget:
        return [pallas_linear(x, w, b) for w, b in zip(weights, biases)]

    tm = _pick_row_tile(M, per_row, fixed, budget)
    x2 = x.reshape(M, Din)

    in_specs = [pl.BlockSpec((tm, Din), lambda i: (i, 0))]
    args = [x2]
    for w in weights:
        in_specs.append(pl.BlockSpec((Din, w.shape[1]), lambda i: (0, 0)))
        args.append(w)
    for w, b in zip(weights, biases):
        in_specs.append(pl.BlockSpec((1, w.shape[1]), lambda i: (0, 0)))
        args.append(b.reshape(1, w.shape[1]))
    out_specs = [pl.BlockSpec((tm, w.shape[1]), lambda i: (i, 0)) for w in weights]
    out_shapes = [jax.ShapeDtypeStruct((M, w.shape[1]), x.dtype) for w in weights]

    outs = pl.pallas_call(
        _make_proj_kernel(len(weights)),
        out_shape=out_shapes,
        grid=(pl.cdiv(M, tm),),
        in_specs=in_specs,
        out_specs=out_specs,
        compiler_params=pltpu.CompilerParams(
            dimension_semantics=("parallel",),
            vmem_limit_bytes=limit),
    )(*args)
    return [o.reshape(B, L, o.shape[-1]) for o in outs]


# ----------------------------------------------------------------------------
# Flash (KV-blocked online-softmax) attention, heads packed in the last dim
# ----------------------------------------------------------------------------
def _flash_attention_kernel(q_ref, k_ref, v_ref, o_ref, m_ref, l_ref, acc_ref,
                            *, heads, d_keys, d_values, approx_recip):
    # q_ref: (1, tq, heads*E)  k_ref: (1, ts, heads*E)  v_ref: (1, ts, heads*Dv)
    # o_ref: (1, tq, heads*Dv)
    # Scratch (f32, persistent across the S grid axis):
    #   m_ref, l_ref: (heads, tq, 1)   acc_ref: (tq, heads*Dv)
    s_idx = pl.program_id(3)

    @pl.when(s_idx == 0)
    def _():
        m_ref[...] = jnp.full(m_ref.shape, -jnp.inf, jnp.float32)
        l_ref[...] = jnp.zeros(l_ref.shape, jnp.float32)
        acc_ref[...] = jnp.zeros(acc_ref.shape, jnp.float32)

    q = q_ref[0]          # softmax scale already folded into Wq (no scale here)
    k = k_ref[0]
    v = v_ref[0]

    # Unrolled per-head loop; only one head's (tq, ts) score/exp tiles are live
    # at a time, the running numerator goes straight into the VMEM accumulator.
    for h in range(heads):
        qh = q[:, h * d_keys:(h + 1) * d_keys]            # (tq, E)
        kh = k[:, h * d_keys:(h + 1) * d_keys]            # (ts, E)
        vh = v[:, h * d_values:(h + 1) * d_values]        # (ts, Dv)
        s = lax.dot_general(qh, kh, (((1,), (1,)), ((), ())),
                            preferred_element_type=jnp.float32)       # (tq, ts)
        m_prev = m_ref[h]                                             # (tq, 1)
        m_new = jnp.maximum(m_prev, jnp.max(s, axis=-1, keepdims=True))
        alpha = jnp.exp(m_prev - m_new)                               # (tq, 1)
        p = jnp.exp(s - m_new)                                        # f32
        l_ref[h] = alpha * l_ref[h] + jnp.sum(p, axis=-1, keepdims=True)
        pv = jnp.dot(p.astype(vh.dtype), vh, preferred_element_type=jnp.float32)
        sl = slice(h * d_values, (h + 1) * d_values)
        acc_ref[:, sl] = alpha * acc_ref[:, sl] + pv
        m_ref[h] = m_new

    @pl.when(s_idx == pl.num_programs(3) - 1)
    def _():
        for h in range(heads):
            sl = slice(h * d_values, (h + 1) * d_values)
            l_h = l_ref[h]
            inv = pl.reciprocal(l_h, approx=True) if approx_recip else 1.0 / l_h
            acc_ref[:, sl] = acc_ref[:, sl] * inv
        o_ref[0] = acc_ref[...].astype(o_ref.dtype)       # one lane-dense store


def pallas_full_attention(q, k, v, *, n_heads, d_keys, d_values,
                          tq_cap=256, ts_cap=512, approx_recip=True):
    """q: (B, L, H*E), k: (B, S, H*E), v: (B, S, H*Dv) -> (B, L, H*Dv).

    Unmasked softmax attention; 1/sqrt(E) must already be folded into q's
    projection weights (see prepare_attention_params).
    """
    B, L, _ = q.shape
    S = k.shape[1]
    H = n_heads
    limit = _vmem_limit_bytes()
    budget = int(limit * 0.8)
    xi = _itemsize(q.dtype)

    tq = _divisor_tile(L, tq_cap, 8)
    ts = _divisor_tile(S, ts_cap, 8)

    def aligned(hc):
        return hc == H or ((hc * d_keys) % 128 == 0 and (hc * d_values) % 128 == 0)

    def footprint(hc):
        e, dv = hc * d_keys, hc * d_values
        return (2 * tq * e * xi + 2 * ts * e * xi + 2 * ts * dv * xi   # q, k, v
                + 2 * tq * dv * xi                                     # out
                + tq * dv * 4 + 2 * hc * tq * 128 * 4                  # acc, m, l
                + 3 * tq * ts * 4)                                     # live s/p tiles

    cands = [hc for hc in range(H, 0, -1) if H % hc == 0 and aligned(hc)]
    hc = next((c for c in cands if footprint(c) <= budget), cands[-1])

    kern = functools.partial(_flash_attention_kernel, heads=hc, d_keys=d_keys,
                             d_values=d_values, approx_recip=approx_recip)
    return pl.pallas_call(
        kern,
        out_shape=jax.ShapeDtypeStruct((B, L, H * d_values), q.dtype),
        grid=(B, H // hc, L // tq, S // ts),
        in_specs=[
            pl.BlockSpec((1, tq, hc * d_keys), lambda b, h, lq, s: (b, lq, h)),
            pl.BlockSpec((1, ts, hc * d_keys), lambda b, h, lq, s: (b, s, h)),
            pl.BlockSpec((1, ts, hc * d_values), lambda b, h, lq, s: (b, s, h)),
        ],
        out_specs=pl.BlockSpec((1, tq, hc * d_values),
                               lambda b, h, lq, s: (b, lq, h)),
        scratch_shapes=[
            pltpu.VMEM((hc, tq, 1), jnp.float32),            # running max
            pltpu.VMEM((hc, tq, 1), jnp.float32),            # running denom
            pltpu.VMEM((tq, hc * d_values), jnp.float32),    # running numerator
        ],
        compiler_params=pltpu.CompilerParams(
            dimension_semantics=("parallel", "parallel", "parallel", "arbitrary"),
            vmem_limit_bytes=limit),
    )(q, k, v)


# ----------------------------------------------------------------------------
# AttentionLayer forward
# ----------------------------------------------------------------------------
def prepare_attention_params(params, *, n_heads):
    """One-time weight transform: fold 1/sqrt(d_keys) into Wq/bq (in f32)."""
    d_keys = params["wq"].shape[1] // n_heads
    scale = 1.0 / math.sqrt(d_keys)
    out = dict(params)
    out["wq"] = params["wq"] * scale
    out["bq"] = params["bq"] * scale
    return out


def attention_layer_forward(params, queries, keys, values, attn_mask=None, *,
                            n_heads, compute_dtype=None, approx_recip=True):
    """Forward pass. `params` must come from prepare_attention_params."""
    # TODO(synk): attn_mask is accepted but ignored (unmasked FullAttention,
    #             i.e. the attn_mask=None path of the reference module).
    del attn_mask
    H = n_heads
    same_qkv = (queries is keys) and (keys is values)
    same_kv = keys is values

    if compute_dtype is not None:
        # Softmax scale is already folded into the f32 Wq, so the bf16 cast
        # adds no low-precision pre-matmul multiply.
        queries = queries.astype(compute_dtype)
        keys = queries if same_qkv else keys.astype(compute_dtype)
        values = keys if same_kv else values.astype(compute_dtype)
        params = {name: p.astype(compute_dtype) for name, p in params.items()}

    d_keys = params["wq"].shape[1] // H
    d_values = params["wv"].shape[1] // H

    # Fused projections: single pass over the activations where tensors are shared.
    if same_qkv:
        q, k, v = fused_projection(
            queries,
            [params["wq"], params["wk"], params["wv"]],
            [params["bq"], params["bk"], params["bv"]])
    elif same_kv:
        (q,) = fused_projection(queries, [params["wq"]], [params["bq"]])
        k, v = fused_projection(
            keys, [params["wk"], params["wv"]], [params["bk"], params["bv"]])
    else:
        q = pallas_linear(queries, params["wq"], params["bq"])
        k = pallas_linear(keys, params["wk"], params["bk"])
        v = pallas_linear(values, params["wv"], params["bv"])

    # Heads stay packed in the last dim; no HBM transposes around attention.
    out = pallas_full_attention(q, k, v, n_heads=H, d_keys=d_keys,
                                d_values=d_values, approx_recip=approx_recip)
    return pallas_linear(out, params["wo"], params["bo"])   # (B, L, d_model)


def init_params(key, d_model, n_heads, d_keys=None, d_values=None,
                dtype=jnp.float32):
    d_keys = d_keys or d_model // n_heads
    d_values = d_values or d_model // n_heads
    ks = jax.random.split(key, 8)

    def lin(kw, kb, fan_in, fan_out):
        s = 1.0 / math.sqrt(fan_in)
        w = jax.random.uniform(kw, (fan_in, fan_out), dtype, -s, s)  # (in, out)
        b = jax.random.uniform(kb, (fan_out,), dtype, -s, s)
        return w, b

    wq, bq = lin(ks[0], ks[1], d_model, d_keys * n_heads)
    wk, bk = lin(ks[2], ks[3], d_model, d_keys * n_heads)
    wv, bv = lin(ks[4], ks[5], d_model, d_values * n_heads)
    wo, bo = lin(ks[6], ks[7], d_values * n_heads, d_model)
    # self.norm (LayerNorm) params exist in __init__ but are unused in forward.
    return {"wq": wq, "bq": bq, "wk": wk, "bk": bk,
            "wv": wv, "bv": bv, "wo": wo, "bo": bo}


# ----------------------------------------------------------------------------
# Pure-JAX reference for correctness checking (uses RAW, unscaled params)
# ----------------------------------------------------------------------------
def reference_forward(params, queries, keys, values, *, n_heads):
    B, L, _ = queries.shape
    S = keys.shape[1]
    H = n_heads
    q = queries @ params["wq"] + params["bq"]
    k = keys @ params["wk"] + params["bk"]
    v = values @ params["wv"] + params["bv"]
    E = q.shape[-1] // H
    Dv = v.shape[-1] // H
    qh = q.reshape(B, L, H, E)
    kh = k.reshape(B, S, H, E)
    vh = v.reshape(B, S, H, Dv)
    scores = jnp.einsum("blhe,bshe->bhls", qh, kh) / math.sqrt(E)
    a = jax.nn.softmax(scores, axis=-1)
    oh = jnp.einsum("bhls,bshd->blhd", a, vh)
    return oh.reshape(B, L, H * Dv) @ params["wo"] + params["bo"]


if __name__ == "__main__":
    B, L, S, d_model, n_heads = 2, 8, 8, 32, 4
    key = jax.random.PRNGKey(0)
    kp1, kp2, kq, kk, kv, k3 = jax.random.split(key, 6)

    # --- Config 1: self-attention (q = k = v) — exercises the fused-QKV path.
    params1 = init_params(kp1, d_model, n_heads)
    prep1 = prepare_attention_params(params1, n_heads=n_heads)
    x = jax.random.normal(kq, (B, L, d_model), jnp.float32)
    out1 = jax.block_until_ready(
        attention_layer_forward(prep1, x, x, x, None, n_heads=n_heads))
    ref1 = reference_forward(params1, x, x, x, n_heads=n_heads)
    assert out1.shape == (B, L, d_model)
    assert jnp.allclose(out1, ref1, atol=5e-3, rtol=5e-3), \
        f"self-attn mismatch: {jnp.max(jnp.abs(out1 - ref1))}"

    # --- Config 2: cross-attention with d_keys != d_values.
    params2 = init_params(kp2, d_model, n_heads, d_keys=16, d_values=8)
    prep2 = prepare_attention_params(params2, n_heads=n_heads)
    q_in = jax.random.normal(kq, (B, L, d_model), jnp.float32)
    k_in = jax.random.normal(kk, (B, S, d_model), jnp.float32)
    v_in = jax.random.normal(kv, (B, S, d_model), jnp.float32)
    out2 = jax.block_until_ready(
        attention_layer_forward(prep2, q_in, k_in, v_in, None, n_heads=n_heads))
    ref2 = reference_forward(params2, q_in, k_in, v_in, n_heads=n_heads)
    assert out2.shape == (B, L, d_model)
    assert jnp.allclose(out2, ref2, atol=5e-3, rtol=5e-3), \
        f"cross-attn mismatch: {jnp.max(jnp.abs(out2 - ref2))}"

    # --- Config 3: exercise the KV-blocked flash recurrence with several S and
    #     L blocks (forced small tile caps), exact-reciprocal path.
    B3, L3, S3, H3, E3 = 1, 32, 64, 2, 128
    kq3, kk3, kv3 = jax.random.split(k3, 3)
    q3 = jax.random.normal(kq3, (B3, L3, H3 * E3), jnp.float32)
    k3a = jax.random.normal(kk3, (B3, S3, H3 * E3), jnp.float32)
    v3 = jax.random.normal(kv3, (B3, S3, H3 * E3), jnp.float32)
    out3 = jax.block_until_ready(
        pallas_full_attention(q3, k3a, v3, n_heads=H3, d_keys=E3, d_values=E3,
                              tq_cap=16, ts_cap=16, approx_recip=False))
    qh3 = q3.reshape(B3, L3, H3, E3)
    kh3 = k3a.reshape(B3, S3, H3, E3)
    vh3 = v3.reshape(B3, S3, H3, E3)
    sc3 = jnp.einsum("blhe,bshe->bhls", qh3, kh3)   # scale folded upstream
    ref3 = jnp.einsum("bhls,bshd->blhd", jax.nn.softmax(sc3, -1),
                      vh3).reshape(B3, L3, H3 * E3)
    assert jnp.allclose(out3, ref3, atol=2e-3, rtol=2e-3), \
        f"flash recurrence mismatch: {jnp.max(jnp.abs(out3 - ref3))}"

    # --- bf16 compute path (v6e/v5e/v7x MXU-friendly); sanity check only.
    out_bf16 = jax.block_until_ready(
        attention_layer_forward(prep1, x, x, x, None, n_heads=n_heads,
                                compute_dtype=jnp.bfloat16))
    assert out_bf16.shape == (B, L, d_model)
    assert bool(jnp.all(jnp.isfinite(out_bf16.astype(jnp.float32))))

    print("KERNEL_OK")
</pallas_src>

<mosaic_0001>
module attributes {stable_mosaic.version = 11 : i64} {
  func.func @kernel(%arg0: i32, %arg1: memref<16x32xf32, #tpu.memory_space<vmem>>, %arg2: memref<32x32xf32, #tpu.memory_space<vmem>>, %arg3: memref<32x32xf32, #tpu.memory_space<vmem>>, %arg4: memref<32x32xf32, #tpu.memory_space<vmem>>, %arg5: memref<1x32xf32, #tpu.memory_space<vmem>>, %arg6: memref<1x32xf32, #tpu.memory_space<vmem>>, %arg7: memref<1x32xf32, #tpu.memory_space<vmem>>, %arg8: memref<16x32xf32, #tpu.memory_space<vmem>>, %arg9: memref<16x32xf32, #tpu.memory_space<vmem>>, %arg10: memref<16x32xf32, #tpu.memory_space<vmem>>) attributes {dimension_semantics = [#tpu.dimension_semantics<parallel>], iteration_bounds = array<i64: 1>, scalar_prefetch = 0 : i64, scratch_operands = 0 : i64, tpu.core_type = #tpu.core_type<tc>, window_params = [{transform_indices = @transform_0, window_bounds = array<i64: 16, 32>}, {pipeline_mode = #tpu.pipeline_mode<synchronous>, transform_indices = @transform_1, window_bounds = array<i64: 32, 32>}, {pipeline_mode = #tpu.pipeline_mode<synchronous>, transform_indices = @transform_2, window_bounds = array<i64: 32, 32>}, {pipeline_mode = #tpu.pipeline_mode<synchronous>, transform_indices = @transform_3, window_bounds = array<i64: 32, 32>}, {pipeline_mode = #tpu.pipeline_mode<synchronous>, transform_indices = @transform_4, window_bounds = array<i64: 1, 32>}, {pipeline_mode = #tpu.pipeline_mode<synchronous>, transform_indices = @transform_5, window_bounds = array<i64: 1, 32>}, {pipeline_mode = #tpu.pipeline_mode<synchronous>, transform_indices = @transform_6, window_bounds = array<i64: 1, 32>}, {transform_indices = @transform_7, window_bounds = array<i64: 16, 32>}, {transform_indices = @transform_8, window_bounds = array<i64: 16, 32>}, {transform_indices = @transform_9, window_bounds = array<i64: 16, 32>}]} {
    %c0 = arith.constant 0 : index
    %c0_0 = arith.constant 0 : index
    %0 = vector.load %arg1[%c0, %c0_0] : memref<16x32xf32, #tpu.memory_space<vmem>>, vector<16x32xf32>
    %c0_1 = arith.constant 0 : index
    %c0_2 = arith.constant 0 : index
    %1 = vector.load %arg2[%c0_1, %c0_2] : memref<32x32xf32, #tpu.memory_space<vmem>>, vector<32x32xf32>
    %cst = arith.constant dense<0.000000e+00> : vector<16x32xf32>
    %2 = tpu.matmul %0, %1, %cst {dimension_numbers = #tpu.dot_dimension_numbers<[1], [0], [0], [1], [0, 0, 1, 1], [], []>} : vector<16x32xf32>, vector<32x32xf32>, vector<16x32xf32> -> vector<16x32xf32>
    %c0_3 = arith.constant 0 : index
    %c0_4 = arith.constant 0 : index
    %3 = vector.load %arg5[%c0_3, %c0_4] : memref<1x32xf32, #tpu.memory_space<vmem>>, vector<1x32xf32>
    %4 = vector.broadcast %3 : vector<1x32xf32> to vector<16x32xf32>
    %5 = arith.addf %2, %4 : vector<16x32xf32>
    %c0_5 = arith.constant 0 : index
    %c0_6 = arith.constant 0 : index
    %6 = vector.load %arg8[%c0_5, %c0_6] : memref<16x32xf32, #tpu.memory_space<vmem>>, vector<16x32xf32>
    tpu.vector_store %arg8[%c0_5, %c0_6], %5 {strides = array<i32>} : memref<16x32xf32, #tpu.memory_space<vmem>>, vector<16x32xf32>,
    %c0_7 = arith.constant 0 : index
    %c0_8 = arith.constant 0 : index
    %7 = vector.load %arg3[%c0_7, %c0_8] : memref<32x32xf32, #tpu.memory_space<vmem>>, vector<32x32xf32>
    %cst_9 = arith.constant dense<0.000000e+00> : vector<16x32xf32>
    %8 = tpu.matmul %0, %7, %cst_9 {dimension_numbers = #tpu.dot_dimension_numbers<[1], [0], [0], [1], [0, 0, 1, 1], [], []>} : vector<16x32xf32>, vector<32x32xf32>, vector<16x32xf32> -> vector<16x32xf32>
    %c0_10 = arith.constant 0 : index
    %c0_11 = arith.constant 0 : index
    %9 = vector.load %arg6[%c0_10, %c0_11] : memref<1x32xf32, #tpu.memory_space<vmem>>, vector<1x32xf32>
    %10 = vector.broadcast %9 : vector<1x32xf32> to vector<16x32xf32>
    %11 = arith.addf %8, %10 : vector<16x32xf32>
    %c0_12 = arith.constant 0 : index
    %c0_13 = arith.constant 0 : index
    %12 = vector.load %arg9[%c0_12, %c0_13] : memref<16x32xf32, #tpu.memory_space<vmem>>, vector<16x32xf32>
    tpu.vector_store %arg9[%c0_12, %c0_13], %11 {strides = array<i32>} : memref<16x32xf32, #tpu.memory_space<vmem>>, vector<16x32xf32>,
    %c0_14 = arith.constant 0 : index
    %c0_15 = arith.constant 0 : index
    %13 = vector.load %arg4[%c0_14, %c0_15] : memref<32x32xf32, #tpu.memory_space<vmem>>, vector<32x32xf32>
    %cst_16 = arith.constant dense<0.000000e+00> : vector<16x32xf32>
    %14 = tpu.matmul %0, %13, %cst_16 {dimension_numbers = #tpu.dot_dimension_numbers<[1], [0], [0], [1], [0, 0, 1, 1], [], []>} : vector<16x32xf32>, vector<32x32xf32>, vector<16x32xf32> -> vector<16x32xf32>
    %c0_17 = arith.constant 0 : index
    %c0_18 = arith.constant 0 : index
    %15 = vector.load %arg7[%c0_17, %c0_18] : memref<1x32xf32, #tpu.memory_space<vmem>>, vector<1x32xf32>
    %16 = vector.broadcast %15 : vector<1x32xf32> to vector<16x32xf32>
    %17 = arith.addf %14, %16 : vector<16x32xf32>
    %c0_19 = arith.constant 0 : index
    %c0_20 = arith.constant 0 : index
    %18 = vector.load %arg10[%c0_19, %c0_20] : memref<16x32xf32, #tpu.memory_space<vmem>>, vector<16x32xf32>
    tpu.vector_store %arg10[%c0_19, %c0_20], %17 {strides = array<i32>} : memref<16x32xf32, #tpu.memory_space<vmem>>, vector<16x32xf32>,
    return
  }
  func.func @transform_0(%arg0: i32) -> (i32, i32) {
    %c0_i32 = arith.constant 0 : i32
    %c0_i32_0 = arith.constant 0 : i32
    return %arg0, %c0_i32 : i32, i32
  }
  func.func @transform_1(%arg0: i32) -> (i32, i32) {
    %c0_i32 = arith.constant 0 : i32
    %c0_i32_0 = arith.constant 0 : i32
    %c0_i32_1 = arith.constant 0 : i32
    return %c0_i32, %c0_i32_0 : i32, i32
  }
  func.func @transform_2(%arg0: i32) -> (i32, i32) {
    %c0_i32 = arith.constant 0 : i32
    %c0_i32_0 = arith.constant 0 : i32
    %c0_i32_1 = arith.constant 0 : i32
    return %c0_i32, %c0_i32_0 : i32, i32
  }
  func.func @transform_3(%arg0: i32) -> (i32, i32) {
    %c0_i32 = arith.constant 0 : i32
    %c0_i32_0 = arith.constant 0 : i32
    %c0_i32_1 = arith.constant 0 : i32
    return %c0_i32, %c0_i32_0 : i32, i32
  }
  func.func @transform_4(%arg0: i32) -> (i32, i32) {
    %c0_i32 = arith.constant 0 : i32
    %c0_i32_0 = arith.constant 0 : i32
    %c0_i32_1 = arith.constant 0 : i32
    return %c0_i32, %c0_i32_0 : i32, i32
  }
  func.func @transform_5(%arg0: i32) -> (i32, i32) {
    %c0_i32 = arith.constant 0 : i32
    %c0_i32_0 = arith.constant 0 : i32
    %c0_i32_1 = arith.constant 0 : i32
    return %c0_i32, %c0_i32_0 : i32, i32
  }
  func.func @transform_6(%arg0: i32) -> (i32, i32) {
    %c0_i32 = arith.constant 0 : i32
    %c0_i32_0 = arith.constant 0 : i32
    %c0_i32_1 = arith.constant 0 : i32
    return %c0_i32, %c0_i32_0 : i32, i32
  }
  func.func @transform_7(%arg0: i32) -> (i32, i32) {
    %c0_i32 = arith.constant 0 : i32
    %c0_i32_0 = arith.constant 0 : i32
    return %arg0, %c0_i32 : i32, i32
  }
  func.func @transform_8(%arg0: i32) -> (i32, i32) {
    %c0_i32 = arith.constant 0 : i32
    %c0_i32_0 = arith.constant 0 : i32
    return %arg0, %c0_i32 : i32, i32
  }
  func.func @transform_9(%arg0: i32) -> (i32, i32) {
    %c0_i32 = arith.constant 0 : i32
    %c0_i32_0 = arith.constant 0 : i32
    return %arg0, %c0_i32 : i32, i32
  }
}

</mosaic_0001>

<bundles_post_ra>
// kernel: tpu_custom_call.1
= control target key start
LH: loop header
LB: loop body
LE: loop exit
PB: predicated region body
PF: predicated region fallthrough
CT: control target
= control target key end

     0   :  { %15 = vsyncpa [#allocation3], 0  ;;  %s872_s0 = inlined_call_operand.hbm [shape: f32[16,32], index: 0, kind: input, shape index: {}]   ;;  %s873_s1 = inlined_call_operand.hbm [shape: f32[32,32], index: 1, kind: input, shape index: {}]   ;;  %s874_s2 = inlined_call_operand.hbm [shape: f32[32,32], index: 2, kind: input, shape index: {}]   ;;  %s875_s3 = inlined_call_operand.hbm [shape: f32[32,32], index: 3, kind: input, shape index: {}]   ;;  %s876_s4 = inlined_call_operand.vmem [shape: f32[1,32], index: 4, kind: input, shape index: {}]   ;;  %s877_s5 = inlined_call_operand.vmem [shape: f32[1,32], index: 5, kind: input, shape index: {}]   ;;  %s878_s6 = inlined_call_operand.vmem [shape: f32[1,32], index: 6, kind: input, shape index: {}]   ;;  %s879_s7 = inlined_call_operand.hbm [shape: f32[16,32], index: 7, kind: output, shape index: {0}]   ;;  %s880_s8 = inlined_call_operand.hbm [shape: f32[16,32], index: 8, kind: output, shape index: {1}]   ;;  %s881_s9 = inlined_call_operand.hbm [shape: f32[16,32], index: 9, kind: output, shape index: {2}]  }
   0x1   :  { %16 = vsyncpa [#allocation6], 0 }
   0x2   :  { %17 = vsyncpa [#allocation9], 0 }
   0x3   :  { %18 = vsyncpa [#allocation4], 0 }
   0x4   :  { %19 = vsyncpa [#allocation12], 0  ;;  %s666_s30 = smov [#allocation5]   ;;  %s667_s11 = smov [#allocation2]  }
   0x5   :  { %s37_s10 = sshll.u32 %s666_s30, 4  ;;  %s25_s12 = sshll.u32 %s667_s11, 4  ;;  %s38_s10 = int_to_ptr.vmem [resolvable:$true] %s37_s10  ;;  %s725_s12 = int_to_ptr.vmem [resolvable:$true] %s25_s12 }
   0x6   :  { %s502_s15 = scalar_lea.hbm %s873_s1, 512 }
   0x7   :  { %p503_p0 = scmp.ne.s32.totalorder %s873_s1, %s502_s15  ;;  %p506_p1 = scmp.lt.u32.totalorder %s502_s15, %s873_s1 }
   0x9   :  { %p508_p2 = pnand %p506_p1, %p503_p0 }
   0xb   :  { %511 = shalt.err (!%p508_p2)
}
   0xc   :  { %s512_s20 = scalar_lea.vmem %s38_s10, 512  ;;  %p517_p4 = scmp.lt.s32.totalorder %s38_s10, %s38_s10 }
   0xd   :  { %p513_p3 = scmp.ne.s32.totalorder %s38_s10, %s512_s20  ;;  %p518_p5 = scmp.lt.s32.totalorder %s512_s20, %s512_s20 }
   0xf   :  { %p519_p6 = por %p518_p5, %p517_p4 }
  0x11   :  { %p520_p7 = pnand %p519_p6, %p513_p3 }
  0x13   :  { %523 = shalt.err (!%p520_p7)
}
  0x14   :  { %s668_s21 = smov 128   ;;  %s669_s22 = smov 8  }
  0x15   :  { %43 = dma.hbm_to_vmem [thread:$0]  %s873_s1, 512, %s38_s10, [#allocation6], %s668_s21, %s668_s21, %s669_s22  }
  0x16   :  { %s524_s27 = scalar_lea.hbm %s872_s0, 256 }
  0x17   :  { %p525_p8 = scmp.ne.s32.totalorder %s872_s0, %s524_s27  ;;  %p528_p9 = scmp.lt.u32.totalorder %s524_s27, %s872_s0 }
  0x19   :  { %p530_p10 = pnand %p528_p9, %p525_p8 }
  0x1b   :  { %533 = shalt.err (!%p530_p10)
}
  0x1c   :  { %s534_s13 = scalar_lea.vmem %s725_s12, 256  ;;  %p539_p12 = scmp.lt.s32.totalorder %s725_s12, %s725_s12 }
  0x1d   :  { %p535_p11 = scmp.ne.s32.totalorder %s725_s12, %s534_s13  ;;  %p540_p13 = scmp.lt.s32.totalorder %s534_s13, %s534_s13 }
  0x1f   :  { %p541_p0 = por %p540_p13, %p539_p12 }
  0x21   :  { %p542_p1 = pnand %p541_p0, %p535_p11 }
  0x23   :  { %545 = shalt.err (!%p542_p1)
}
  0x24   :  { %31 = dma.hbm_to_vmem [thread:$0]  %s872_s0, 256, %s725_s12, [#allocation3], %s668_s21, %s668_s21, %s669_s22  }
  0x25   :  { %s670_s14 = smov [#allocation7]   ;;  %s671_s16 = smov [#allocation8]  }
  0x26   :  { %s49_s15 = sshll.u32 %s670_s14, 4  ;;  %s61_s17 = sshll.u32 %s671_s16, 4  ;;  %s50_s15 = int_to_ptr.vmem [resolvable:$true] %s49_s15  ;;  %s762_s17 = int_to_ptr.vmem [resolvable:$true] %s61_s17 }
  0x27   :  { %s546_s20 = scalar_lea.hbm %s874_s2, 512 }
  0x28   :  { %p547_p2 = scmp.ne.s32.totalorder %s874_s2, %s546_s20  ;;  %p550_p3 = scmp.lt.u32.totalorder %s546_s20, %s874_s2 }
  0x2a   :  { %p552_p4 = pnand %p550_p3, %p547_p2 }
  0x2c   :  { %555 = shalt.err (!%p552_p4)
}
  0x2d   :  { %s556_s0 = scalar_lea.vmem %s50_s15, 512  ;;  %p561_p6 = scmp.lt.s32.totalorder %s50_s15, %s50_s15 }
  0x2e   :  { %p557_p5 = scmp.ne.s32.totalorder %s50_s15, %s556_s0  ;;  %p562_p7 = scmp.lt.s32.totalorder %s556_s0, %s556_s0 }
  0x30   :  { %p563_p8 = por %p562_p7, %p561_p6 }
  0x32   :  { %p564_p9 = pnand %p563_p8, %p557_p5 }
  0x34   :  { %567 = shalt.err (!%p564_p9)
}
  0x35   :  { %55 = dma.hbm_to_vmem [thread:$0]  %s874_s2, 512, %s50_s15, [#allocation6], %s668_s21, %s668_s21, %s669_s22  }
  0x36   :  { %s568_s30 = scalar_lea.hbm %s875_s3, 512 }
  0x37   :  { %p569_p10 = scmp.ne.s32.totalorder %s875_s3, %s568_s30  ;;  %p572_p11 = scmp.lt.u32.totalorder %s568_s30, %s875_s3 }
  0x39   :  { %p574_p12 = pnand %p572_p11, %p569_p10 }
  0x3b   :  { %577 = shalt.err (!%p574_p12)
}
  0x3c   :  { %s578_s14 = scalar_lea.vmem %s762_s17, 512  ;;  %p583_p0 = scmp.lt.s32.totalorder %s762_s17, %s762_s17 }
  0x3d   :  { %p579_p13 = scmp.ne.s32.totalorder %s762_s17, %s578_s14  ;;  %p584_p1 = scmp.lt.s32.totalorder %s578_s14, %s578_s14 }
  0x3f   :  { %p585_p2 = por %p584_p1, %p583_p0 }
  0x41   :  { %p586_p3 = pnand %p585_p2, %p579_p13 }
  0x43   :  { %589 = shalt.err (!%p586_p3)
}
  0x44   :  { %67 = dma.hbm_to_vmem [thread:$0]  %s875_s3, 512, %s762_s17, [#allocation9], %s668_s21, %s668_s21, %s669_s22  }
  0x45   :  { %656 = dma.done.wait [#allocation3], 256  }
  0x46   :  { %657 = vsyncadd [#allocation3], 4294967040 }
  0x47   :  { %658 = dma.done.wait [#allocation6], 1024  }
  0x48   :  { %659 = vsyncadd [#allocation6], 4294966272 }
  0x49   :  { %660 = dma.done.wait [#allocation9], 512  }
  0x4a   :  { %661 = vsyncadd [#allocation9], 4294966784  ;;  %v88_v0 = vld [vmem:[#allocation5] sm:$0xff]  ;;  %v89_v1 = vld [vmem:[#allocation5 + $0x8] sm:$0xff]  ;;  %vm99_vm0 = vcmask 261120   ;;  %s672_s19 = smov [#allocation10]  }
  0x4b   :  { %v90_v2 = vld [vmem:[#allocation5 + $0x10] sm:$0xff]  ;;  %v469_v3 = vpack.c.bf16 %v89_v1, %v88_v0  ;;  %v91_v4 = vld [vmem:[#allocation5 + $0x18] sm:$0xff]  ;;  %v183_v5 = vld [vmem:[#allocation7] sm:$0xff]  ;;  %s364_s20 = sshll.u32 %s672_s19, 4  ;;  %s673_s23 = smov [#allocation11]   ;;  %s365_s20 = int_to_ptr.vmem [resolvable:$true] %s364_s20 }
  0x4c   :  { %v184_v6 = vld [vmem:[#allocation7 + $0x8] sm:$0xff]  ;;  %v473_v7 = vpack.c.bf16 %v91_v4, %v90_v2  ;;  %v86_v9 = vld [vmem:[#allocation2] sm:$0xff]  ;;  %v271_v10 = vld [vmem:[#allocation8] sm:$0xff]  ;;  %s376_s24 = sshll.u32 %s673_s23, 4  ;;  %s590_s25 = scalar_lea.vmem %s365_s20, 256  ;;  %s812_s24 = int_to_ptr.vmem [resolvable:$true] %s376_s24 }
  0x4d   :  { %v477_v8 = vpack.c.bf16 %v184_v6, %v183_v5  ;;  %470 = vmatprep.subr.bf16.mxu0 %v469_v3  ;;  %444 = vmatprep.mubr.msk.f32.mxu0 %vm99_vm0, %v86_v9  ;;  %v272_v11 = vld [vmem:[#allocation8 + $0x8] sm:$0xff]  ;;  %v185_v12 = vld [vmem:[#allocation7 + $0x10] sm:$0xff]  ;;  %v186_v13 = vld [vmem:[#allocation7 + $0x18] sm:$0xff]  ;;  %p591_p4 = scmp.ne.s32.totalorder %s365_s20, %s590_s25  ;;  %p595_p5 = scmp.lt.s32.totalorder %s365_s20, %s365_s20 }
  0x4e   :  { %472 = vmatpush3.bf16.msra.mxu0 %v469_v3  ;;  %v481_v14 = vpack.c.bf16 %v186_v13, %v185_v12  ;;  %v485_v15 = vpack.c.bf16 %v272_v11, %v271_v10  ;;  %v273_v16 = vld [vmem:[#allocation8 + $0x10] sm:$0xff]  ;;  %v274_v17 = vld [vmem:[#allocation8 + $0x18] sm:$0xff]  ;;  %455 = vmatprep.mubr.msk.f32.mxu1 %vm99_vm0, %v86_v9  ;;  %p596_p6 = scmp.lt.s32.totalorder %s590_s25, %s590_s25 }
  0x4f   :  { %478 = vmatprep.subr.bf16.mxu1 %v477_v8  ;;  %474 = vmatprep.subr.bf16.mxu0 %v473_v7  ;;  %v87_v18 = vld [vmem:[#allocation2 + $0x8] sm:$0xff]  ;;  %v489_v19 = vpack.c.bf16 %v274_v17, %v273_v16  ;;  %v409_v20 = vld [vmem:[%s876_s4] ss:$0 sm:$0xff] }
  0x50   :  { %480 = vmatpush3.bf16.msra.mxu1 %v477_v8  ;;  %v412_v21 = vld [vmem:[%s877_s5] ss:$0 sm:$0xff]  ;;  %p597_p7 = por %p596_p6, %p595_p5 }
  0x51   :  { %482 = vmatprep.subr.bf16.mxu1 %v481_v14  ;;  %v415_v30 = vld [vmem:[%s878_s6] ss:$0 sm:$0xff] }
  0x52   :  { %476 = vmatpush3.bf16.msra.mxu0 %v473_v7  ;;  %p598_p8 = pnand %p597_p7, %p591_p4 }
  0x53   :  { %486 = vmatprep.subr.bf16.mxu0 %v485_v15 }
  0x54   :  { %484 = vmatpush3.bf16.msra.mxu1 %v481_v14 }
  0x55   :  { %445 = vmatmul.mubr.msk.f32.vlgmr.msra.gmra.mrb[0].mxu0 %vm99_vm0, %v87_v18 }
  0x56   :  { %488 = vmatpush3.bf16.msra.mxu0 %v485_v15  ;;  %466 = vmatprep.mubr.msk.f32.mxu0 %vm99_vm0, %v86_v9 }
  0x57   :  { %456 = vmatmul.mubr.msk.f32.vlgmr.msra.gmra.mrb[0].mxu1 %vm99_vm0, %v87_v18  ;;  %490 = vmatprep.subr.bf16.mxu0 %v489_v19 }
  0x5a   :  { %492 = vmatpush3.bf16.msra.mxu0 %v489_v19 }
  0x5d   :  { %467 = vmatmul.mubr.msk.f32.vlgmr.msra.gmra.mrb[2].mxu0 %vm99_vm0, %v87_v18 }
 0x128   :  { %v446_v22 = vpop.f32.mrb[0].mxu0 }
 0x129   :  { %v178_v23 = vadd.f32 %v446_v22, %v409_v20  ;;  %v172_v24 = vpop.f32.mrb[1].mxu0 }
 0x12a   :  { %v457_v25 = vpop.f32.mrb[0].mxu1  ;;  %v173_v26 = vadd.f32 %v409_v20, %v172_v24 }
 0x12b   :  { %v266_v27 = vadd.f32 %v457_v25, %v412_v21  ;;  %v260_v28 = vpop.f32.mrb[1].mxu1  ;;  %182 = vst.msk [vmem:[#allocation10 + $0x8] sm:$0xff] %vm99_vm0, %v178_v23 }
 0x12c   :  { %v261_v29 = vadd.f32 %v412_v21, %v260_v28  ;;  %181 = vst.msk [vmem:[#allocation10] sm:$0xff] %vm99_vm0, %v173_v26 }
 0x12d   :  { %270 = vst.msk [vmem:[#allocation11 + $0x8] sm:$0xff] %vm99_vm0, %v266_v27 }
 0x12e   :  { %269 = vst.msk [vmem:[#allocation11] sm:$0xff] %vm99_vm0, %v261_v29 }
 0x12f   :  { %601 = shalt.err (!%p598_p8)
}
 0x130   :  { %s602_s12 = scalar_lea.hbm %s879_s7, 256 }
 0x131   :  { %p603_p9 = scmp.ne.s32.totalorder %s879_s7, %s602_s12  ;;  %p606_p10 = scmp.lt.u32.totalorder %s602_s12, %s879_s7 }
 0x133   :  { %p608_p11 = pnand %p606_p10, %p603_p9 }
 0x135   :  { %611 = shalt.err (!%p608_p11)
}
 0x136   :  { %370 = dma.vmem_to_hbm [thread:$0]  %s365_s20, 256, %s879_s7, [#allocation4], %s668_s21, %s668_s21, %s669_s22  }
 0x137   :  { %s612_s13 = scalar_lea.vmem %s812_s24, 256  ;;  %p617_p13 = scmp.lt.s32.totalorder %s812_s24, %s812_s24 }
 0x138   :  { %p613_p12 = scmp.ne.s32.totalorder %s812_s24, %s612_s13  ;;  %p618_p0 = scmp.lt.s32.totalorder %s612_s13, %s612_s13 }
 0x13a   :  { %p619_p1 = por %p618_p0, %p617_p13 }
 0x13c   :  { %p620_p2 = pnand %p619_p1, %p613_p12 }
 0x13e   :  { %623 = shalt.err (!%p620_p2)
}
 0x13f   :  { %s624_s14 = scalar_lea.hbm %s880_s8, 256 }
 0x140   :  { %p625_p3 = scmp.ne.s32.totalorder %s880_s8, %s624_s14  ;;  %p628_p4 = scmp.lt.u32.totalorder %s624_s14, %s880_s8 }
 0x142   :  { %p630_p5 = pnand %p628_p4, %p625_p3 }
 0x144   :  { %633 = shalt.err (!%p630_p5)
}
 0x145   :  { %382 = dma.vmem_to_hbm [thread:$0]  %s812_s24, 256, %s880_s8, [#allocation12], %s668_s21, %s668_s21, %s669_s22   ;;  %v468_v31 = vpop.f32.mrb[2].mxu0 }
 0x146   :  { %s674_s18 = smov [#allocation13]   ;;  %v354_v32 = vadd.f32 %v468_v31, %v415_v30  ;;  %v348_v33 = vpop.f32.mrb[3].mxu0 }
 0x147   :  { %s388_s19 = sshll.u32 %s674_s18, 4  ;;  %v349_v34 = vadd.f32 %v415_v30, %v348_v33  ;;  %s389_s19 = int_to_ptr.vmem [resolvable:$true] %s388_s19 }
 0x148   :  { %358 = vst.msk [vmem:[#allocation13 + $0x8] sm:$0xff] %vm99_vm0, %v354_v32  ;;  %s634_s20 = scalar_lea.vmem %s389_s19, 256  ;;  %p639_p7 = scmp.lt.s32.totalorder %s389_s19, %s389_s19 }
 0x149   :  { %357 = vst.msk [vmem:[#allocation13] sm:$0xff] %vm99_vm0, %v349_v34  ;;  %p635_p6 = scmp.ne.s32.totalorder %s389_s19, %s634_s20  ;;  %p640_p8 = scmp.lt.s32.totalorder %s634_s20, %s634_s20 }
 0x14b   :  { %p641_p9 = por %p640_p8, %p639_p7 }
 0x14d   :  { %p642_p10 = pnand %p641_p9, %p635_p6 }
 0x14f   :  { %645 = shalt.err (!%p642_p10)
}
 0x150   :  { %s646_s24 = scalar_lea.hbm %s881_s9, 256 }
 0x151   :  { %p647_p11 = scmp.ne.s32.totalorder %s881_s9, %s646_s24  ;;  %p650_p12 = scmp.lt.u32.totalorder %s646_s24, %s881_s9 }
 0x153   :  { %p652_p13 = pnand %p650_p12, %p647_p11 }
 0x155   :  { %655 = shalt.err (!%p652_p13)
}
 0x156   :  { %394 = dma.vmem_to_hbm [thread:$0]  %s389_s19, 256, %s881_s9, [#allocation12], %s668_s21, %s668_s21, %s669_s22  }
 0x157   :  { %662 = dma.done.wait [#allocation4], 256  }
 0x158   :  { %663 = vsyncadd [#allocation4], 4294967040 }
 0x159   :  { %664 = dma.done.wait [#allocation12], 512  }
 0x15a   :  { %665 = vsyncadd [#allocation12], 4294966784 }
 0x15b   :  { %404 = vsyncpa [#allocation3], 1 }
 0x15c   :  { %405 = vsyncpa [#allocation6], 1 }
 0x15d   :  { %406 = vsyncpa [#allocation9], 1 }
 0x15e   :  { %407 = vsyncpa [#allocation4], 1 }
 0x15f   :  { %408 = vsyncpa [#allocation12], 1 }

</bundles_post_ra>
